<compile_context>
chip_gen: v7x
topology: tpu7x:2x2x1
jax: 0.10.0
libtpu: 0.0.40
codegen_flags: <defaults>
</compile_context>

<pallas_src>
import functools

import jax
import jax.numpy as jnp
from jax.experimental import pallas as pl
from jax.experimental.pallas import tpu as pltpu

PATCH = 14            # proj kernel == stride
DOWN_K = 2            # down kernel == stride
UP_K = 7              # up kernel == stride


def _round_up(v, m):
    return (v + m - 1) // m * m


def _cdiv(a, b):
    return -(-a // b)


# ----------------------------- Pallas kernel --------------------------------
def slr_kernel(w_ref, b_ref, s_ref, xt_ref, ot_ref):
    # Single fused GEMM: (O, CKp) @ (CKp, tile_n) -> (O, tile_n), f32 accumulate.
    acc = jnp.dot(w_ref[...], xt_ref[...], preferred_element_type=jnp.float32)
    # f32 epilogue: fused bias then per-channel scaler (both broadcast on lanes).
    ot_ref[...] = ((acc + b_ref[...]) * s_ref[...]).astype(ot_ref.dtype)


# --------------------------- jitted forward core -----------------------------
@functools.partial(jax.jit, static_argnames=("tile_n_target", "compute_dtype"))
def _slr_forward_jit(x, params, *, tile_n_target=2048, compute_dtype=jnp.bfloat16):
    w_proj, b_proj = params['w_proj'], params['b_proj']
    w_down, b_down = params['w_down'], params['b_down']
    w_up, b_up = params['w_up'], params['b_up']
    scaler = params['scaler']

    B, C, H, W = x.shape
    O = w_proj.shape[0]
    Hp, Wp = H // PATCH, W // PATCH
    N = B * Hp * Wp
    CK = C * PATCH * PATCH

    # --- algebraic fold of the low-rank path (tiny, f32, once per trace) ---
    # W_lr[o, c, 2i+a, 2j+b] = sum_h w_up[o,h,i,j] * w_down[h,c,a,b]
    w_lr = jnp.einsum('ohij,hcab->ocijab', w_up, w_down)          # (O,C,7,7,2,2)
    w_lr = w_lr.transpose(0, 1, 2, 4, 3, 5).reshape(O, C, PATCH, PATCH)
    # b_lr[o] = b_up[o] + sum_{h,i,j} w_up[o,h,i,j] * b_down[h]
    b_lr = b_up + jnp.einsum('ohij,h->o', w_up, b_down)
    w_total = w_proj + w_lr            # scaler applied in the f32 kernel epilogue
    b_total = b_proj + b_lr

    # --- tile sizing (VMEM-aware, lane-dense, minimal N padding) ---
    CK_pad = _round_up(CK, 128)
    N128 = _round_up(N, 128)

    vmem_budget = 48 << 20             # fits v7x's 64 MiB/TC with headroom
    weight_bytes = O * CK_pad * 2 + 4 * O * 128
    per_col_bytes = 2 * CK_pad * 2 + 2 * O * 4     # dbl-buffered xt(bf16) + out(f32)
    tile_cap = max(128, (vmem_budget - weight_bytes) // per_col_bytes // 128 * 128)
    target = max(128, min(tile_n_target, tile_cap))

    grid_n = _cdiv(N128, target)
    if N128 >= 256:
        grid_n = max(grid_n, 2)        # keep >=2 steps so v7x can use both TCs
    tile_n = _round_up(_cdiv(N128, grid_n), 128)
    N_pad = grid_n * tile_n

    # --- single fused bf16 im2col relayout: cast + patch-transpose + pad ---
    # rows ordered (c, kh, kw); columns ordered (b, hp, wp)
    xt = (x.astype(compute_dtype)
            .reshape(B, C, Hp, PATCH, Wp, PATCH)
            .transpose(1, 3, 5, 0, 2, 4)
            .reshape(CK, N))
    xt = jnp.pad(xt, ((0, CK_pad - CK), (0, N_pad - N)))          # (CK_pad, N_pad)

    w_k = jnp.pad(w_total.reshape(O, CK),
                  ((0, 0), (0, CK_pad - CK))).astype(compute_dtype)   # (O, CK_pad)
    b_k = b_total.reshape(O, 1).astype(jnp.float32)                   # (O, 1)
    s_k = scaler.reshape(O, 1).astype(jnp.float32)                    # (O, 1)

    vmem_needed = (2 * CK_pad * tile_n * 2          # double-buffered xt (bf16)
                   + 2 * O * tile_n * 4             # double-buffered out (f32)
                   + weight_bytes)
    vmem_limit = int(min(vmem_budget, max(2 * vmem_needed, 32 << 20)))

    out_t = pl.pallas_call(
        slr_kernel,
        out_shape=jax.ShapeDtypeStruct((O, N_pad), x.dtype),
        grid=(grid_n,),
        in_specs=[
            pl.BlockSpec((O, CK_pad), lambda i: (0, 0)),        # folded weight (resident)
            pl.BlockSpec((O, 1), lambda i: (0, 0)),             # fused bias (f32)
            pl.BlockSpec((O, 1), lambda i: (0, 0)),             # per-channel scaler (f32)
            pl.BlockSpec((CK_pad, tile_n), lambda i: (0, i)),   # x patches (lane-dense)
        ],
        out_specs=pl.BlockSpec((O, tile_n), lambda i: (0, i)),  # lane-dense output
        compiler_params=pltpu.CompilerParams(
            dimension_semantics=("parallel",),
            vmem_limit_bytes=vmem_limit),
    )(w_k, b_k, s_k, xt)

    # back to PyTorch NCHW output convention: (B, O, H/14, W/14)
    out = out_t[:, :N].T.reshape(B, Hp, Wp, O).transpose(0, 3, 1, 2)
    return out


# ------------------------------- wrapper -------------------------------------
def slr_adapter_forward(x, params, *, hidden_dim=16, tile_n=2048,
                        compute_dtype=jnp.bfloat16):
    """x: (B, C, H, W) float32, H % 14 == 0, W % 14 == 0.
    Returns (B, O, H//14, W//14) like the PyTorch module."""
    print('x.shape:', x.shape)  # mirrors the PyTorch module's debug print
    return _slr_forward_jit(x, params, tile_n_target=tile_n,
                            compute_dtype=compute_dtype)


# ---------------- pure-JAX reference (for correctness check) ----------------
def _conv_ref(x, w, b, stride):
    y = jax.lax.conv_general_dilated(
        x, w, window_strides=stride, padding='VALID',
        dimension_numbers=('NCHW', 'OIHW', 'NCHW'))
    return y + b[None, :, None, None]


def slr_reference(x, params):
    x_lr = _conv_ref(x, params['w_down'], params['b_down'], (DOWN_K, DOWN_K))
    x_lr = _conv_ref(x_lr, params['w_up'], params['b_up'], (UP_K, UP_K))
    y = _conv_ref(x, params['w_proj'], params['b_proj'], (PATCH, PATCH))
    y = y + x_lr
    return y * params['scaler'][None, :, None, None]


if __name__ == "__main__":
    B, C_in, C_out, hidden_dim = 2, 3, 8, 16
    H = W = 28  # -> 2x2 grid of 14x14 patches per image

    keys = jax.random.split(jax.random.PRNGKey(0), 8)
    params = {
        # proj: Conv2d(C_in, C_out, kernel=(14,14), stride=(14,14)) (frozen)
        'w_proj': 0.05 * jax.random.normal(keys[0], (C_out, C_in, PATCH, PATCH), jnp.float32),
        'b_proj': 0.05 * jax.random.normal(keys[1], (C_out,), jnp.float32),
        # down: Conv2d(C_in, hidden, kernel=(2,2), stride=(2,2))
        'w_down': 0.05 * jax.random.normal(keys[2], (hidden_dim, C_in, DOWN_K, DOWN_K), jnp.float32),
        'b_down': 0.05 * jax.random.normal(keys[3], (hidden_dim,), jnp.float32),
        # up: Conv2d(hidden, C_out, kernel=(7,7), stride=(7,7))
        'w_up': 0.05 * jax.random.normal(keys[4], (C_out, hidden_dim, UP_K, UP_K), jnp.float32),
        'b_up': 0.05 * jax.random.normal(keys[5], (C_out,), jnp.float32),
        # module __init__ uses torch.ones; perturb slightly so the scaling
        # path is actually exercised by the check.
        'scaler': 1.0 + 0.1 * jax.random.normal(keys[6], (C_out,), jnp.float32),
    }

    x = jax.random.normal(keys[7], (B, C_in, H, W), jnp.float32)

    y = slr_adapter_forward(x, params, hidden_dim=hidden_dim)
    y = jax.block_until_ready(y)

    y_ref = slr_reference(x, params)
    assert y.shape == y_ref.shape == (B, C_out, H // PATCH, W // PATCH)
    max_err = float(jnp.max(jnp.abs(y - y_ref)))
    # Tolerance is relaxed vs a pure-f32 path because MXU inputs are bf16
    # (f32 accumulation; bias + scaler applied in f32 epilogue).
    assert max_err < 2e-2, f"mismatch vs reference: max abs err = {max_err}"

    print("KERNEL_OK")
</pallas_src>

<mosaic_0001>
module attributes {stable_mosaic.version = 11 : i64} {
  func.func @slr_kernel(%arg0: i32, %arg1: memref<8x640xbf16, #tpu.memory_space<vmem>>, %arg2: memref<8x1xf32, #tpu.memory_space<vmem>>, %arg3: memref<8x1xf32, #tpu.memory_space<vmem>>, %arg4: memref<640x128xbf16, #tpu.memory_space<vmem>>, %arg5: memref<8x128xf32, #tpu.memory_space<vmem>>) attributes {dimension_semantics = [#tpu.dimension_semantics<parallel>], iteration_bounds = array<i64: 1>, scalar_prefetch = 0 : i64, scratch_operands = 0 : i64, tpu.core_type = #tpu.core_type<tc>, window_params = [{pipeline_mode = #tpu.pipeline_mode<synchronous>, transform_indices = @transform_0, window_bounds = array<i64: 8, 640>}, {pipeline_mode = #tpu.pipeline_mode<synchronous>, transform_indices = @transform_1, window_bounds = array<i64: 8, 1>}, {pipeline_mode = #tpu.pipeline_mode<synchronous>, transform_indices = @transform_2, window_bounds = array<i64: 8, 1>}, {transform_indices = @transform_3, window_bounds = array<i64: 640, 128>}, {transform_indices = @transform_4, window_bounds = array<i64: 8, 128>}]} {
    %c0 = arith.constant 0 : index
    %c0_0 = arith.constant 0 : index
    %0 = vector.load %arg1[%c0, %c0_0] : memref<8x640xbf16, #tpu.memory_space<vmem>>, vector<8x640xbf16>
    %c0_1 = arith.constant 0 : index
    %c0_2 = arith.constant 0 : index
    %1 = vector.load %arg4[%c0_1, %c0_2] : memref<640x128xbf16, #tpu.memory_space<vmem>>, vector<640x128xbf16>
    %cst = arith.constant dense<0.000000e+00> : vector<8x128xf32>
    %2 = tpu.matmul %0, %1, %cst {dimension_numbers = #tpu.dot_dimension_numbers<[1], [0], [0], [1], [0, 0, 1, 1], [], []>} : vector<8x640xbf16>, vector<640x128xbf16>, vector<8x128xf32> -> vector<8x128xf32>
    %c0_3 = arith.constant 0 : index
    %c0_4 = arith.constant 0 : index
    %3 = vector.load %arg2[%c0_3, %c0_4] : memref<8x1xf32, #tpu.memory_space<vmem>>, vector<8x1xf32>
    %4 = vector.broadcast %3 : vector<8x1xf32> to vector<8x128xf32>
    %5 = arith.addf %2, %4 : vector<8x128xf32>
    %c0_5 = arith.constant 0 : index
    %c0_6 = arith.constant 0 : index
    %6 = vector.load %arg3[%c0_5, %c0_6] : memref<8x1xf32, #tpu.memory_space<vmem>>, vector<8x1xf32>
    %7 = vector.broadcast %6 : vector<8x1xf32> to vector<8x128xf32>
    %8 = arith.mulf %5, %7 : vector<8x128xf32>
    %c0_7 = arith.constant 0 : index
    %c0_8 = arith.constant 0 : index
    %9 = vector.load %arg5[%c0_7, %c0_8] : memref<8x128xf32, #tpu.memory_space<vmem>>, vector<8x128xf32>
    tpu.vector_store %arg5[%c0_7, %c0_8], %8 {strides = array<i32>} : memref<8x128xf32, #tpu.memory_space<vmem>>, vector<8x128xf32>,
    return
  }
  func.func @transform_0(%arg0: i32) -> (i32, i32) {
    %c0_i32 = arith.constant 0 : i32
    %c0_i32_0 = arith.constant 0 : i32
    %c0_i32_1 = arith.constant 0 : i32
    return %c0_i32, %c0_i32_0 : i32, i32
  }
  func.func @transform_1(%arg0: i32) -> (i32, i32) {
    %c0_i32 = arith.constant 0 : i32
    %c0_i32_0 = arith.constant 0 : i32
    %c0_i32_1 = arith.constant 0 : i32
    return %c0_i32, %c0_i32_0 : i32, i32
  }
  func.func @transform_2(%arg0: i32) -> (i32, i32) {
    %c0_i32 = arith.constant 0 : i32
    %c0_i32_0 = arith.constant 0 : i32
    %c0_i32_1 = arith.constant 0 : i32
    return %c0_i32, %c0_i32_0 : i32, i32
  }
  func.func @transform_3(%arg0: i32) -> (i32, i32) {
    %c0_i32 = arith.constant 0 : i32
    %c0_i32_0 = arith.constant 0 : i32
    return %c0_i32, %arg0 : i32, i32
  }
  func.func @transform_4(%arg0: i32) -> (i32, i32) {
    %c0_i32 = arith.constant 0 : i32
    %c0_i32_0 = arith.constant 0 : i32
    return %c0_i32, %arg0 : i32, i32
  }
}

</mosaic_0001>

<bundles_post_ra>
// kernel: _slr_forward_jit.1
= control target key start
LH: loop header
LB: loop body
LE: loop exit
PB: predicated region body
PF: predicated region fallthrough
CT: control target
= control target key end

     0   :  { %v664_v1 = vmov 0   ;;  %v665_v36 = vmov 0.0   ;;  %vm666_vm0 = vmmov 0   ;;  %s830_s3 = inlined_call_operand.vmem [shape: bf16[640,128], index: 3, kind: input, shape index: {}]   ;;  %s831_s0 = inlined_call_operand.vmem [shape: bf16[8,640], index: 0, kind: input, shape index: {}]   ;;  %s832_s1 = inlined_call_operand.vmem [shape: f32[8,1], index: 1, kind: input, shape index: {}]   ;;  %s833_s2 = inlined_call_operand.vmem [shape: f32[8,1], index: 2, kind: input, shape index: {}]   ;;  %s834_s4 = inlined_call_operand.vmem [shape: f32[8,128], index: 4, kind: output, shape index: {}]  }
   0x1   :  { %v619_v0 = vld [vmem:[%s830_s3 + $0x40] sm:$0xff]   ;;  %618 = vset.pattern.permute.xlu0 %v664_v1  ;;  %v623_v5 = vld [vmem:[%s830_s3 + $0x48] sm:$0xff]   ;;  %v627_v9 = vld [vmem:[%s830_s3 + $0x50] sm:$0xff]  }
   0x2   :  { %v620_v2 = vld [vmem:[%s830_s3] sm:$0xff]   ;;  %542 = vmatprep.subr.bf16.mxu0 %v619_v0  ;;  %v624_v6 = vld [vmem:[%s830_s3 + $0x8] sm:$0xff]   ;;  %v628_v10 = vld [vmem:[%s830_s3 + $0x10] sm:$0xff]  }
   0x3   :  { %v621_v3 = vld [vmem:[%s830_s3 + $0xc0] sm:$0xff]   ;;  %543 = vmatpush3.bf16.msra.mxu0 %v620_v2  ;;  %v625_v7 = vld [vmem:[%s830_s3 + $0xc8] sm:$0xff]   ;;  %v629_v11 = vld [vmem:[%s830_s3 + $0xd0] sm:$0xff]  }
   0x4   :  { %v622_v4 = vld [vmem:[%s830_s3 + $0x80] sm:$0xff]   ;;  %564 = vmatprep.subr.bf16.mxu1 %v621_v3  ;;  %544 = vmatprep.subr.bf16.mxu0 %v623_v5  ;;  %v626_v8 = vld [vmem:[%s830_s3 + $0x88] sm:$0xff]   ;;  %v630_v12 = vld [vmem:[%s830_s3 + $0x90] sm:$0xff]  }
   0x5   :  { %565 = vmatpush3.bf16.msra.mxu1 %v622_v4  ;;  %v631_v13 = vld [vmem:[%s830_s3 + $0x58] sm:$0xff]   ;;  %v635_v17 = vld [vmem:[%s830_s3 + $0x60] sm:$0xff]   ;;  %v639_v21 = vld [vmem:[%s830_s3 + $0x68] sm:$0xff]  }
   0x6   :  { %566 = vmatprep.subr.bf16.mxu1 %v625_v7  ;;  %v632_v14 = vld [vmem:[%s830_s3 + $0x18] sm:$0xff]   ;;  %v636_v18 = vld [vmem:[%s830_s3 + $0x20] sm:$0xff]   ;;  %v640_v22 = vld [vmem:[%s830_s3 + $0x28] sm:$0xff]  }
   0x7   :  { %545 = vmatpush3.bf16.msra.mxu0 %v624_v6  ;;  %v633_v15 = vld [vmem:[%s830_s3 + $0xd8] sm:$0xff]   ;;  %v637_v19 = vld [vmem:[%s830_s3 + $0xe0] sm:$0xff]   ;;  %v641_v23 = vld [vmem:[%s830_s3 + $0xe8] sm:$0xff]  }
   0x8   :  { %546 = vmatprep.subr.bf16.mxu0 %v627_v9  ;;  %v634_v16 = vld [vmem:[%s830_s3 + $0x98] sm:$0xff]   ;;  %v638_v20 = vld [vmem:[%s830_s3 + $0xa0] sm:$0xff]   ;;  %v642_v24 = vld [vmem:[%s830_s3 + $0xa8] sm:$0xff]  }
   0x9   :  { %567 = vmatpush3.bf16.msra.mxu1 %v626_v8  ;;  %v643_v25 = vld [vmem:[%s830_s3 + $0x70] sm:$0xff]   ;;  %v647_v29 = vld [vmem:[%s830_s3 + $0x78] sm:$0xff]   ;;  %v18_v32 = vld [vmem:[%s831_s0] sm:$0xff] }
   0xa   :  { %568 = vmatprep.subr.bf16.mxu1 %v629_v11  ;;  %v644_v26 = vld [vmem:[%s830_s3 + $0x30] sm:$0xff]   ;;  %v648_v30 = vld [vmem:[%s830_s3 + $0x38] sm:$0xff]   ;;  %v497_v33 = vcombine.low %v18_v32, %v18_v32  ;;  %v498_v34 = vcombine.high %v18_v32, %v18_v32  ;;  %v19_v37 = vld [vmem:[%s831_s0 + $0x8] sm:$0xff] }
   0xb   :  { %547 = vmatpush3.bf16.msra.mxu0 %v628_v10  ;;  %v645_v27 = vld [vmem:[%s830_s3 + $0xf0] sm:$0xff]   ;;  %v649_v31 = vld [vmem:[%s830_s3 + $0xf8] sm:$0xff]   ;;  %v499_v38 = vcombine.low %v19_v37, %v19_v37  ;;  %v500_v39 = vcombine.high %v19_v37, %v19_v37  ;;  %v656_v40 = vld [vmem:[%s830_s3 + $0x100] sm:$0xff]  }
   0xc   :  { %548 = vmatprep.subr.bf16.mxu0 %v631_v13  ;;  %v646_v28 = vld [vmem:[%s830_s3 + $0xb0] sm:$0xff]   ;;  %v653_v35 = vld [vmem:[%s830_s3 + $0xb8] sm:$0xff]   ;;  %397 = vmatprep.mubr.bf16.mxu0 %v498_v34  ;;  %v657_v41 = vld [vmem:[%s830_s3 + $0x108] sm:$0xff]  }
   0xd   :  { %569 = vmatpush3.bf16.msra.mxu1 %v630_v12  ;;  %437 = vmatprep.mubr.bf16.mxu1 %v500_v39  ;;  %v658_v42 = vld [vmem:[%s830_s3 + $0x110] sm:$0xff]   ;;  %v101_v43 = vld [vmem:[%s832_s1] sm:$0xff]  ;;  %v659_v45 = vld [vmem:[%s830_s3 + $0x118] sm:$0xff]  }
   0xe   :  { %570 = vmatprep.subr.bf16.mxu1 %v633_v15  ;;  %104 = vperm.xlu0 %618, %v101_v43   ;;  %v485_v44 = vld [vmem:[%s833_s2] sm:$0xff]  ;;  %v661_v47 = vld [vmem:[%s830_s3 + $0x128] sm:$0xff]   ;;  %v662_v48 = vld [vmem:[%s830_s3 + $0x130] sm:$0xff]  }
   0xf   :  { %549 = vmatpush3.bf16.msra.mxu0 %v632_v14  ;;  %v660_v46 = vld [vmem:[%s830_s3 + $0x120] sm:$0xff]   ;;  %v663_v49 = vld [vmem:[%s830_s3 + $0x138] sm:$0xff]   ;;  %v652_v50 = vld [vmem:[%s831_s0 + $0x10] ss:$0 sps:$4 sm:$0xff]  }
  0x10   :  { %550 = vmatprep.subr.bf16.mxu0 %v635_v17 }
  0x11   :  { %571 = vmatpush3.bf16.msra.mxu1 %v634_v16 }
  0x12   :  { %572 = vmatprep.subr.bf16.mxu1 %v637_v19  ;;  %488 = vperm.xlu0 %618, %v485_v44  }
  0x13   :  { %551 = vmatpush3.bf16.msra.mxu0 %v636_v18 }
  0x14   :  { %552 = vmatprep.subr.bf16.mxu0 %v639_v21 }
  0x15   :  { %573 = vmatpush3.bf16.msra.mxu1 %v638_v20 }
  0x16   :  { %574 = vmatprep.subr.bf16.mxu1 %v641_v23 }
  0x17   :  { %553 = vmatpush3.bf16.msra.mxu0 %v640_v22 }
  0x18   :  { %554 = vmatprep.subr.bf16.mxu0 %v643_v25 }
  0x19   :  { %575 = vmatpush3.bf16.msra.mxu1 %v642_v24 }
  0x1a   :  { %576 = vmatprep.subr.bf16.mxu1 %v645_v27 }
  0x1b   :  { %555 = vmatpush3.bf16.msra.mxu0 %v644_v26 }
  0x1c   :  { %556 = vmatprep.subr.bf16.mxu0 %v647_v29 }
  0x1d   :  { %577 = vmatpush3.bf16.msra.mxu1 %v646_v28 }
  0x1e   :  { %578 = vmatprep.subr.bf16.mxu1 %v649_v31 }
  0x1f   :  { %557 = vmatpush3.bf16.msra.mxu0 %v648_v30 }
  0x20   :  { %595 = vmatprep.subr.bf16.mxu0 %v665_v36 }
  0x21   :  { %579 = vmatpush3.bf16.msra.mxu1 %v653_v35 }
  0x22   :  { %398 = vmatmul.mubr.bf16.vlgmr.msra.gmra.mrb[0].mxu0 %v497_v33 }
  0x23   :  { %596 = vmatpush3.bf16.msra.mxu0 %v656_v40  ;;  %611 = vmatprep.mubr.msk.bf16.mxu0 %vm666_vm0, %v665_v36 }
  0x24   :  { %438 = vmatmul.mubr.bf16.vlgmr.msra.gmra.mrb[0].mxu1 %v499_v38  ;;  %597 = vmatprep.subr.bf16.mxu0 %v665_v36 }
  0x27   :  { %598 = vmatpush3.bf16.msra.mxu0 %v657_v41 }
  0x28   :  { %599 = vmatprep.subr.bf16.mxu0 %v665_v36 }
  0x2b   :  { %600 = vmatpush3.bf16.msra.mxu0 %v658_v42 }
  0x2c   :  { %601 = vmatprep.subr.bf16.mxu0 %v665_v36 }
  0x2f   :  { %602 = vmatpush3.bf16.msra.mxu0 %v659_v45 }
  0x30   :  { %603 = vmatprep.subr.bf16.mxu0 %v665_v36 }
  0x33   :  { %604 = vmatpush3.bf16.msra.mxu0 %v660_v46 }
  0x34   :  { %605 = vmatprep.subr.bf16.mxu0 %v665_v36 }
  0x37   :  { %606 = vmatpush3.bf16.msra.mxu0 %v661_v47 }
  0x38   :  { %607 = vmatprep.subr.bf16.mxu0 %v665_v36 }
  0x3b   :  { %608 = vmatpush3.bf16.msra.mxu0 %v662_v48 }
  0x3c   :  { %609 = vmatprep.subr.bf16.mxu0 %v665_v36 }
  0x3f   :  { %610 = vmatpush3.bf16.msra.mxu0 %v663_v49 }
  0x42   :  { %612 = vmatmul.mubr.bf16.vlgmr.msra.gmra.mrb[4].mxu0 %v652_v50 }
  0x8d   :  { %v105_v53 = vpop.permute.xlu0 %104 }
  0x91   :  { %v489_v3 = vpop.permute.xlu0 %488 }
  0xf5   :  { %v558_v51 = vpop.f32.mrb[0].mxu0 }
  0xf6   :  { %v559_v52 = vpop.f32.mrb[1].mxu0 }
  0xf7   :  { %v560_v54 = vadd.f32 %v559_v52, %v558_v51  ;;  %v561_v55 = vpop.f32.mrb[2].mxu0  ;;  %v580_v56 = vpop.f32.mrb[0].mxu1 }
  0xf8   :  { %v562_v57 = vpop.f32.mrb[3].mxu0  ;;  %v581_v58 = vpop.f32.mrb[1].mxu1 }
  0xf9   :  { %v400_v59 = vadd.f32 %v560_v54, %v105_v53  ;;  %v582_v60 = vadd.f32 %v581_v58, %v580_v56  ;;  %v583_v61 = vpop.f32.mrb[2].mxu1 }
  0xfa   :  { %v584_v62 = vpop.f32.mrb[3].mxu1 }
  0xfb   :  { %v440_v63 = vadd.f32 %v582_v60, %v400_v59 }
 0x115   :  { %v479_v0 = vpop.f32.mrb[4].mxu0 }
 0x116   :  { %v480_v1 = vadd.f32 %v479_v0, %v440_v63  ;;  %v613_v2 = vpop.f32.mrb[5].mxu0 }
 0x117   :  { %v482_v4 = vpop.f32.mrb[6].mxu0 }
 0x118   :  { %v491_v5 = vmul.f32 %v489_v3, %v480_v1  ;;  %v614_v6 = vpop.f32.mrb[7].mxu0 }
 0x11a   :  { %492 = vst [vmem:[%s834_s4] sm:$0xff] %v491_v5 }

</bundles_post_ra>
